<compile_context>
chip_gen: v5e
topology: v5e:2x2
jax: 0.10.0
libtpu: 0.0.40
codegen_flags: <defaults>
</compile_context>

<pallas_src>
import jax
import jax.numpy as jnp
from jax.experimental import pallas as pl
from jax.experimental.pallas import tpu as pltpu


def _round_up(x: int, m: int) -> int:
    return ((x + m - 1) // m) * m


def _usable_vmem_bytes() -> int:
    """Generation-aware usable VMEM (physical capacity minus ~20% headroom)."""
    try:
        cap = int(pltpu.get_tpu_info().vmem_capacity_bytes)
    except Exception:
        cap = 64 << 20          # conservative fallback (v7x-sized)
    return int(cap * 0.80)


def prepare_residual_params(alpha, beta, w, b, matmul_dtype=jnp.bfloat16):
    """One-time parameter prep (hoisted out of the per-call path):
    bf16 cast of W halves its DMA/VMEM footprint; alpha/beta/b become (1, F) f32."""
    feat = alpha.shape[-1]
    return (alpha.reshape(1, feat).astype(jnp.float32),
            beta.reshape(1, feat).astype(jnp.float32),
            w.astype(matmul_dtype),
            b.reshape(1, feat).astype(jnp.float32))


def _make_residual_kernel(eps: float, feat: int, rows: int, tm: int, matmul_dtype):
    inv_f = 1.0 / feat
    inv_fm1 = 1.0 / max(feat - 1, 1)
    ragged = (rows % tm) != 0

    def residual_kernel(x_ref, alpha_ref, beta_ref, w_ref, b_ref, o_ref):
        x = x_ref[...].astype(jnp.float32)                       # (tm, F)

        if ragged:
            # Last block is partial: zero garbage rows so they stay finite.
            # (Pallas drops the out-of-range rows on writeback; row-wise ops
            #  cannot leak across rows, this is just NaN/Inf insurance.)
            valid = rows - pl.program_id(0) * tm
            row_ids = jax.lax.broadcasted_iota(jnp.int32, (tm, 1), 0)
            x = jnp.where(row_ids < valid, x, 0.0)

        # --- LayerNormalization (torch semantics: unbiased std, eps on std) ---
        # Two-pass statistics (mean, then centered sum of squares): avoids the
        # ss - n*mean^2 cancellation; the extra reduce hides under the matmul.
        mean = jnp.sum(x, axis=-1, keepdims=True) * inv_f
        d = x - mean
        var = jnp.sum(d * d, axis=-1, keepdims=True) * inv_fm1
        inv = 1.0 / (jnp.sqrt(var) + eps)                        # exact divide
        y = d * inv * alpha_ref[...] + beta_ref[...]             # (tm, F), f32

        # --- sublayer: Linear(features, features) + ReLU (MXU matmul) ---
        # bf16 inputs, f32 accumulation (native MXU path).
        z = jnp.dot(y.astype(matmul_dtype), w_ref[...],
                    preferred_element_type=jnp.float32)
        z = jnp.maximum(z + b_ref[...], 0.0)

        # --- dropout (eval mode -> identity) + residual add ---
        o_ref[...] = (x + z).astype(o_ref.dtype)

    return residual_kernel


def residual_connection(x, alpha2, beta2, w2, b2, *, eps=1e-6, tm=None):
    """x: (batch, seq, features); params from prepare_residual_params().
    Returns x + ReLU(LayerNorm(x) @ W + b)."""
    batch, seq, feat = x.shape
    rows = batch * seq
    x2 = x.reshape(rows, feat)

    in_item = x.dtype.itemsize
    out_item = in_item
    w_bytes = w2.size * w2.dtype.itemsize
    const_bytes = (alpha2.size + beta2.size + b2.size) * 4

    budget = _usable_vmem_bytes()
    # TODO(synk): when resident W + minimum row tiles overrun `budget`
    # (feat >~4K bf16 on v7x), switch to a W column-tiled 2-D grid instead of
    # shrinking tm; unnecessary at the sizes exercised here.

    # --- row tile selection (generation-aware) ---
    if tm is None:
        tm = 1024 if (feat <= 2048 and budget >= (96 << 20)) else 512
    per_row_buf = 2 * feat * (in_item + out_item)     # double-buffered in + out
    avail = budget - w_bytes - const_bytes
    tm_vmem = max(8, avail // per_row_buf) if avail > per_row_buf else 8
    # >= 2 grid steps so "parallel" can shard rows across v7x's 2 TensorCores
    # (harmless on single-TC v5e/v6e).
    tm_two = max(8, _round_up((rows + 1) // 2, 8))
    tm = int(min(tm, tm_vmem, tm_two))
    tm = max(8, (tm // 8) * 8)

    grid_m = pl.cdiv(rows, tm)

    # Corrected working-set estimate: x/out double-buffered, constants resident.
    vmem_est = (2 * tm * feat * in_item + 2 * tm * feat * out_item
                + w_bytes + const_bytes)
    vmem_limit = int(min(budget, max(int(1.5 * vmem_est), 16 << 20)))

    cost = pl.CostEstimate(
        flops=2 * rows * feat * feat + 10 * rows * feat,
        transcendentals=2 * rows,
        bytes_accessed=rows * feat * (in_item + out_item) + w_bytes + const_bytes,
    )

    out = pl.pallas_call(
        _make_residual_kernel(eps, feat, rows, tm, w2.dtype),
        out_shape=jax.ShapeDtypeStruct((rows, feat), x.dtype),
        grid_spec=pltpu.PrefetchScalarGridSpec(
            num_scalar_prefetch=0,
            grid=(grid_m,),
            in_specs=[
                pl.BlockSpec((tm, feat), lambda i: (i, 0)),     # x rows (pipelined)
                pl.BlockSpec((1, feat), lambda i: (0, 0)),      # alpha (resident)
                pl.BlockSpec((1, feat), lambda i: (0, 0)),      # beta  (resident)
                pl.BlockSpec((feat, feat), lambda i: (0, 0)),   # W     (resident)
                pl.BlockSpec((1, feat), lambda i: (0, 0)),      # b     (resident)
            ],
            out_specs=pl.BlockSpec((tm, feat), lambda i: (i, 0)),
        ),
        compiler_params=pltpu.CompilerParams(
            dimension_semantics=("parallel",),
            vmem_limit_bytes=vmem_limit,
        ),
        cost_estimate=cost,
    )(x2, alpha2, beta2, w2, b2)

    return out.reshape(batch, seq, feat)


if __name__ == "__main__":
    batch, seq, feat = 2, 8, 128

    key = jax.random.PRNGKey(0)
    kx, kw, kb = jax.random.split(key, 3)

    x = jax.random.normal(kx, (batch, seq, feat), dtype=jnp.float32)

    # LayerNormalization params (as in __init__: ones / zeros)
    alpha = jnp.ones((feat,), dtype=jnp.float32)
    beta = jnp.zeros((feat,), dtype=jnp.float32)

    # Deterministic sublayer params (Linear features->features)
    w = jax.random.normal(kw, (feat, feat), dtype=jnp.float32) * (1.0 / jnp.sqrt(feat))
    b = jax.random.normal(kb, (feat,), dtype=jnp.float32) * 0.01

    # One-time parameter prep (bf16 W cast hoisted out of the call path).
    alpha2, beta2, w2, b2 = prepare_residual_params(alpha, beta, w, b)

    out = residual_connection(x, alpha2, beta2, w2, b2, eps=1e-6)
    jax.block_until_ready(out)
    assert out.shape == (batch, seq, feat)

    # Pure-JAX reference (torch semantics: ddof=1 std, eps added to std).
    mean = jnp.mean(x, axis=-1, keepdims=True)
    std = jnp.std(x, axis=-1, keepdims=True, ddof=1)
    y = (x - mean) / (std + 1e-6) * alpha + beta
    ref = x + jnp.maximum(jnp.einsum("bsf,fg->bsg", y, w) + b, 0.0)
    err = float(jnp.max(jnp.abs(out - ref)))
    # Error budget is dominated by the intentional bf16 MXU matmul (LN is exact
    # two-pass f32 with an exact divide).
    assert err < 3e-2, f"max abs err {err}"

    print("KERNEL_OK")
</pallas_src>

<mosaic_0001>
module attributes {stable_mosaic.version = 11 : i64} {
  func.func @residual_kernel(%arg0: i32, %arg1: memref<8x128xf32, #tpu.memory_space<vmem>>, %arg2: memref<1x128xf32, #tpu.memory_space<vmem>>, %arg3: memref<1x128xf32, #tpu.memory_space<vmem>>, %arg4: memref<128x128xbf16, #tpu.memory_space<vmem>>, %arg5: memref<1x128xf32, #tpu.memory_space<vmem>>, %arg6: memref<8x128xf32, #tpu.memory_space<vmem>>) attributes {dimension_semantics = [#tpu.dimension_semantics<parallel>], iteration_bounds = array<i64: 2>, scalar_prefetch = 0 : i64, scratch_operands = 0 : i64, tpu.core_type = #tpu.core_type<tc>, window_params = [{transform_indices = @transform_0, window_bounds = array<i64: 8, 128>}, {pipeline_mode = #tpu.pipeline_mode<synchronous>, transform_indices = @transform_1, window_bounds = array<i64: 1, 128>}, {pipeline_mode = #tpu.pipeline_mode<synchronous>, transform_indices = @transform_2, window_bounds = array<i64: 1, 128>}, {pipeline_mode = #tpu.pipeline_mode<synchronous>, transform_indices = @transform_3, window_bounds = array<i64: 128, 128>}, {pipeline_mode = #tpu.pipeline_mode<synchronous>, transform_indices = @transform_4, window_bounds = array<i64: 1, 128>}, {transform_indices = @transform_5, window_bounds = array<i64: 8, 128>}]} {
    %c0 = arith.constant 0 : index
    %c0_0 = arith.constant 0 : index
    %0 = vector.load %arg1[%c0, %c0_0] : memref<8x128xf32, #tpu.memory_space<vmem>>, vector<8x128xf32>
    %cst = arith.constant dense<0.000000e+00> : vector<8xf32>
    %1 = vector.multi_reduction <add>, %0, %cst [1] : vector<8x128xf32> to vector<8xf32>
    %2 = vector.shape_cast %1 : vector<8xf32> to vector<8x1xf32>
    %cst_1 = arith.constant 7.812500e-03 : f32
    %3 = vector.broadcast %cst_1 : f32 to vector<8x1xf32>
    %4 = arith.mulf %2, %3 : vector<8x1xf32>
    %5 = vector.broadcast %4 : vector<8x1xf32> to vector<8x128xf32>
    %6 = arith.subf %0, %5 : vector<8x128xf32>
    %7 = arith.mulf %6, %6 : vector<8x128xf32>
    %cst_2 = arith.constant dense<0.000000e+00> : vector<8xf32>
    %8 = vector.multi_reduction <add>, %7, %cst_2 [1] : vector<8x128xf32> to vector<8xf32>
    %9 = vector.shape_cast %8 : vector<8xf32> to vector<8x1xf32>
    %cst_3 = arith.constant 0.00787401571 : f32
    %10 = vector.broadcast %cst_3 : f32 to vector<8x1xf32>
    %11 = arith.mulf %9, %10 : vector<8x1xf32>
    %12 = math.sqrt %11 : vector<8x1xf32>
    %cst_4 = arith.constant 9.99999997E-7 : f32
    %13 = vector.broadcast %cst_4 : f32 to vector<8x1xf32>
    %14 = arith.addf %12, %13 : vector<8x1xf32>
    %cst_5 = arith.constant 1.000000e+00 : f32
    %15 = vector.broadcast %cst_5 : f32 to vector<8x1xf32>
    %16 = arith.divf %15, %14 : vector<8x1xf32>
    %17 = vector.broadcast %16 : vector<8x1xf32> to vector<8x128xf32>
    %18 = arith.mulf %6, %17 : vector<8x128xf32>
    %c0_6 = arith.constant 0 : index
    %c0_7 = arith.constant 0 : index
    %19 = vector.load %arg2[%c0_6, %c0_7] : memref<1x128xf32, #tpu.memory_space<vmem>>, vector<1x128xf32>
    %20 = vector.broadcast %19 : vector<1x128xf32> to vector<8x128xf32>
    %21 = arith.mulf %18, %20 : vector<8x128xf32>
    %c0_8 = arith.constant 0 : index
    %c0_9 = arith.constant 0 : index
    %22 = vector.load %arg3[%c0_8, %c0_9] : memref<1x128xf32, #tpu.memory_space<vmem>>, vector<1x128xf32>
    %23 = vector.broadcast %22 : vector<1x128xf32> to vector<8x128xf32>
    %24 = arith.addf %21, %23 : vector<8x128xf32>
    %25 = arith.truncf %24 : vector<8x128xf32> to vector<8x128xbf16>
    %c0_10 = arith.constant 0 : index
    %c0_11 = arith.constant 0 : index
    %26 = vector.load %arg4[%c0_10, %c0_11] : memref<128x128xbf16, #tpu.memory_space<vmem>>, vector<128x128xbf16>
    %cst_12 = arith.constant dense<0.000000e+00> : vector<8x128xf32>
    %27 = tpu.matmul %25, %26, %cst_12 {dimension_numbers = #tpu.dot_dimension_numbers<[1], [0], [0], [1], [0, 0, 1, 1], [], []>} : vector<8x128xbf16>, vector<128x128xbf16>, vector<8x128xf32> -> vector<8x128xf32>
    %c0_13 = arith.constant 0 : index
    %c0_14 = arith.constant 0 : index
    %28 = vector.load %arg5[%c0_13, %c0_14] : memref<1x128xf32, #tpu.memory_space<vmem>>, vector<1x128xf32>
    %29 = vector.broadcast %28 : vector<1x128xf32> to vector<8x128xf32>
    %30 = arith.addf %27, %29 : vector<8x128xf32>
    %cst_15 = arith.constant 0.000000e+00 : f32
    %31 = vector.broadcast %cst_15 : f32 to vector<8x128xf32>
    %32 = arith.maximumf %30, %31 : vector<8x128xf32>
    %33 = arith.addf %0, %32 : vector<8x128xf32>
    %c0_16 = arith.constant 0 : index
    %c0_17 = arith.constant 0 : index
    %34 = vector.load %arg6[%c0_16, %c0_17] : memref<8x128xf32, #tpu.memory_space<vmem>>, vector<8x128xf32>
    tpu.vector_store %arg6[%c0_16, %c0_17], %33 {strides = array<i32>} : memref<8x128xf32, #tpu.memory_space<vmem>>, vector<8x128xf32>,
    return
  }
  func.func @transform_0(%arg0: i32) -> (i32, i32) {
    %c0_i32 = arith.constant 0 : i32
    %c0_i32_0 = arith.constant 0 : i32
    return %arg0, %c0_i32 : i32, i32
  }
  func.func @transform_1(%arg0: i32) -> (i32, i32) {
    %c0_i32 = arith.constant 0 : i32
    %c0_i32_0 = arith.constant 0 : i32
    %c0_i32_1 = arith.constant 0 : i32
    return %c0_i32, %c0_i32_0 : i32, i32
  }
  func.func @transform_2(%arg0: i32) -> (i32, i32) {
    %c0_i32 = arith.constant 0 : i32
    %c0_i32_0 = arith.constant 0 : i32
    %c0_i32_1 = arith.constant 0 : i32
    return %c0_i32, %c0_i32_0 : i32, i32
  }
  func.func @transform_3(%arg0: i32) -> (i32, i32) {
    %c0_i32 = arith.constant 0 : i32
    %c0_i32_0 = arith.constant 0 : i32
    %c0_i32_1 = arith.constant 0 : i32
    return %c0_i32, %c0_i32_0 : i32, i32
  }
  func.func @transform_4(%arg0: i32) -> (i32, i32) {
    %c0_i32 = arith.constant 0 : i32
    %c0_i32_0 = arith.constant 0 : i32
    %c0_i32_1 = arith.constant 0 : i32
    return %c0_i32, %c0_i32_0 : i32, i32
  }
  func.func @transform_5(%arg0: i32) -> (i32, i32) {
    %c0_i32 = arith.constant 0 : i32
    %c0_i32_0 = arith.constant 0 : i32
    return %arg0, %c0_i32 : i32, i32
  }
}

</mosaic_0001>

<bundles_post_ra>
// kernel: tpu_custom_call.1
= control target key start
LH: loop header
LB: loop body
LE: loop exit
PB: predicated region body
PF: predicated region fallthrough
CT: control target
= control target key end

     0   :  { %10 = vsyncpa [#allocation3], 0  ;;  %s995_s0 = inlined_call_operand.hbm [shape: f32[16,128], index: 0, kind: input, shape index: {}]   ;;  %s996_s1 = inlined_call_operand.hbm [shape: f32[1,128], index: 1, kind: input, shape index: {}]   ;;  %s997_s2 = inlined_call_operand.vmem [shape: f32[1,128], index: 2, kind: input, shape index: {}]   ;;  %s998_s3 = inlined_call_operand.hbm [shape: bf16[128,128], index: 3, kind: input, shape index: {}]   ;;  %s999_s4 = inlined_call_operand.vmem [shape: f32[1,128], index: 4, kind: input, shape index: {}]   ;;  %s1000_s5 = inlined_call_operand.hbm [shape: f32[16,128], index: 5, kind: output, shape index: {}]  }
   0x1   :  { %12 = vsyncpa [#allocation3 + $0x1], 0 }
   0x2   :  { %13 = vsyncpa [#allocation6], 0 }
   0x3   :  { %14 = vsyncpa [#allocation4], 0 }
   0x4   :  { %16 = vsyncpa [#allocation4 + $0x1], 0  ;;  %s839_s18 = smov 0   ;;  %s841_s19 = smov 0  }
   0x5   :  { %s843_s20 = smov 0   ;;  %s845_s21 = smov 0  }
   0x6 LB: > { %s860_s22 = sadd.s32 4294967295, %s803_s21   ;;  %s511_s23 = sadd.s32 4294967294, %s803_s21   ;;  %s803_s21 = sphi %s845_s21, %s1010_s21   ;;  %s799_s20 = sphi %s843_s20, %s1009_s20   ;;  %s795_s19 = sphi %s841_s19, %s1008_s19   ;;  %s791_s18 = sphi %s839_s18, %s1007_s18  }
   0x7   : > { %p42_p0 = scmp.ne.s32.totalorder %s795_s19, %s791_s18  ;;  %p43_p1 = scmp.eq.s32.totalorder %s860_s22, 0 }
   0x8   : > { %p150_p2 = scmp.eq.s32.totalorder %s860_s22, 1  ;;  %p156_p3 = scmp.eq.s32.totalorder %s511_s23, 1 }
   0x9   : > { %p869_p4 = por %p43_p1, %p42_p0  ;;  %p512_p5 = scmp.ge.s32.totalorder %s803_s21, 1 }
   0xa   : > { %p874_p6 = por %p156_p3, %p42_p0  ;;  %p163_p7 = scmp.lt.s32.totalorder %s803_s21, 3 }
   0xb   : > { %s175_s28 = sshll.u32 %s996_s1, 4  ;;  %s805_s30 = smov [#allocation5]   ;;  %s176_s28 = int_to_ptr.hbm [resolvable:$true] %s175_s28 }
   0xc   : > { %p882_p8 = pnand %p512_p5, %p163_p7  ;;  %s177_s6 = sshll.u32 %s805_s30, 4  ;;  %s178_s6 = int_to_ptr.vmem [resolvable:$true] %s177_s6 }
   0xd   : > { %s189_s9 = sshll.u32 %s998_s3, 4  ;;  %s806_s10 = smov [#allocation7]   ;;  %s190_s9 = int_to_ptr.hbm [resolvable:$true] %s189_s9 }
   0xe   : > { %p579_p10 = pneg %p882_p8  ;;  %s191_s11 = sshll.u32 %s806_s10, 4  ;;  %s192_s11 = int_to_ptr.vmem [resolvable:$true] %s191_s11 }
   0xf   : > { %s807_s12 = smov 64   ;;  %s808_s13 = smov 4  }
  0x10   : > { %p580_p11 = pnand %p579_p10, %p43_p1  ;;  %s895_s14 = sadd.s32 1, %s803_s21  }
  0x11   : > { %s26_s15 = ssub.s32 %s803_s21, %s895_s14  ;;  %s29_s16 = sadd.s32 1, %s799_s20 }
  0x12   : > { %582 = dma.hbm_to_vmem [thread:$0]  (!%p580_p11), %s176_s28, 16, %s178_s6, [#allocation6]  }
  0x13   : > { %585 = dma.hbm_to_vmem [thread:$0]  (!%p580_p11), %s190_s9, 1024, %s192_s11, [#allocation6], %s807_s12, %s807_s12, %s808_s13  }
  0x14   : > { %p27_p12 = scmp.eq.s32.totalorder %s26_s15, 0  ;;  %p36_p13 = scmp.ne.s32.totalorder %s799_s20, %s795_s19 }
  0x15   : > { %p37_p0 = scmp.eq.s32.totalorder %s803_s21, 0  ;;  %p596_p7 = scmp.lt.s32.totalorder %s803_s21, 2 }
  0x16   : > { %s904_s17 = scalar_select %p27_p12, %s799_s20, %s29_s16  }
  0x17   : > { %p38_p3 = por %p37_p0, %p36_p13  ;;  %p908_p5 = por %p150_p2, %p36_p13 }
  0x18   : > { %s208_s26 = sand.u32 1, %s799_s20   ;;  %s517_s28 = sshll.u32 %s803_s21, 3 }
  0x19   : > { %s516_s27 = sshll.u32 %s208_s26, 3  ;;  %s216_s7 = scalar_lea.hbm %s995_s0, %s517_s28 }
  0x1a   : > { %s212_s8 = scalar_lea.vmem [#allocation2], %s516_s27  ;;  %s218_s10 = sshll.u32 %s216_s7, 4  ;;  %s219_s10 = int_to_ptr.hbm [resolvable:$true] %s218_s10 }
  0x1b   : > { %s220_s9 = sshll.u32 %s212_s8, 4  ;;  %p918_p10 = pnand %p596_p7, %p38_p3  ;;  %s221_s9 = int_to_ptr.vmem [resolvable:$true] %s220_s9 }
  0x1c   : > { %s209_s12 = scalar_lea.sflag [#allocation3], %s208_s26  ;;  %s703_s13 = sshra.s32 %s219_s10, 4  ;;  %s704_s13 = int_to_ptr.hbm [resolvable:$true] %s703_s13 }
  0x1d   : > { %s705_s15 = scalar_lea.hbm %s704_s13, 8  ;;  %p707_p11 = pneg %p918_p10 }
  0x1e   : > { %p706_p2 = scmp.ne.s32.totalorder %s704_s13, %s705_s15  ;;  %s710_s28 = scalar_lea.hbm %s995_s0, 16 }
  0x1f   : > { %p711_p0 = scmp.lt.s32.totalorder %s704_s13, %s995_s0  ;;  %p712_p3 = scmp.lt.s32.totalorder %s710_s28, %s705_s15 }
  0x20   : > { %p708_p12 = pnand %p707_p11, %p706_p2 }
  0x21   : > { %p713_p7 = por %p712_p3, %p711_p0 }
  0x22   : > { %p709_p13 = pneg %p708_p12 }
  0x24   : > { %p714_p9 = pnand %p713_p7, %p709_p13 }
  0x26   : > { %717 = shalt.err (!%p714_p9)
}
  0x27   : > { %589 = dma.hbm_to_vmem [thread:$0]  (!%p918_p10), %s219_s10, 128, %s221_s9, %s209_s12  }
  0x28   : > { %229 = sbr.rel (%p882_p8) target bundleno = 473 (0x1d9), region = 40  ;;  %s935_s26 = sand.u32 (!%p882_p8), 1, %s795_s19  }
  0x29   : > { %s519_s7 = sshll.u32 (!%p882_p8), %s935_s26, 3  ;;  %s232_s8 = scalar_lea.sflag (!%p882_p8), [#allocation3], %s935_s26 }
  0x2a   : > { %s235_s13 = scalar_lea.vmem (!%p882_p8), [#allocation2], %s519_s7 }
  0x2d   : > { %778 = dma.done.wait (%p869_p4), %s232_s8, 128  }
  0x2e   : > { %780 = vsyncadd (%p869_p4), %s232_s8, 4294967168 }
  0x2f   : > { %782 = dma.done.wait (%p43_p1), [#allocation6], 1040  }
  0x30   : > { %784 = vsyncadd (%p43_p1), [#allocation6], 4294966256  ;;  %v949_v0 = vld [vmem:[%s235_s13] sm:$0xff]  ;;  %v563_v8 = vld [vmem:[#allocation7 + $0x20] sm:$0xff]  ;;  %s556_s9 = sshll.u32 %s860_s22, 3  ;;  %s272_s27 = scalar_lea.vmem [#allocation8], %s519_s7 }
  0x31   : > { %274 = vadd.xlane.f32.xlu0 %v949_v0  ;;  %v566_v5 = vld [vmem:[#allocation7 + $0x38] sm:$0xff]  ;;  %v565_v6 = vld [vmem:[#allocation7 + $0x30] sm:$0xff]  ;;  %v564_v7 = vld [vmem:[#allocation7 + $0x28] sm:$0xff]  ;;  %s417_s16 = scalar_lea.hbm %s1000_s5, %s556_s9  ;;  %s419_s28 = sshll.u32 %s272_s27, 4  ;;  %s420_s28 = int_to_ptr.vmem [resolvable:$true] %s419_s28 }
  0x32   : > { %390 = vmatpush.bf16.msra.mxu0 %v566_v5  ;;  %v562_v10 = vld [vmem:[#allocation7 + $0x18] sm:$0xff]  ;;  %v561_v12 = vld [vmem:[#allocation7 + $0x10] sm:$0xff]  ;;  %v560_v13 = vld [vmem:[#allocation7 + $0x8] sm:$0xff]  ;;  %s421_s30 = sshll.u32 %s417_s16, 4  ;;  %s407_s22 = scalar_lea.sflag [#allocation4], %s935_s26  ;;  %s422_s30 = int_to_ptr.hbm [resolvable:$true] %s421_s30 }
  0x33   : > { %v559_v17 = vld [vmem:[#allocation7] sm:$0xff]  ;;  %v636_v35 = vld [vmem:[#allocation5] ss:$0 sm:$0xff]  ;;  %v637_v38 = vld [vmem:[%s997_s2] ss:$0 sm:$0xff]  ;;  %s747_s6 = sshra.s32 %s422_s30, 4  ;;  %s748_s6 = int_to_ptr.hbm [resolvable:$true] %s747_s6 }
  0x34   : > { %v638_v42 = vld [vmem:[%s999_s4] ss:$0 sm:$0xff]  ;;  %s749_s8 = scalar_lea.hbm %s748_s6, 8  ;;  %s753_s7 = scalar_lea.hbm %s1000_s5, 16 }
  0x35   : > { %p750_p1 = scmp.ne.s32.totalorder %s748_s6, %s749_s8  ;;  %p754_p9 = scmp.lt.s32.totalorder %s748_s6, %s1000_s5 }
  0x36   : > { %391 = vmatpush.bf16.msra.mxu0 %v565_v6  ;;  %p755_p10 = scmp.lt.s32.totalorder %s753_s7, %s749_s8 }
  0x37   : > { %p751_p4 = pnand %p750_p1, %p908_p5 }
  0x38   : > { %p756_p2 = por %p755_p10, %p754_p9 }
  0x39   : > { %p752_p8 = pneg %p751_p4 }
  0x3a   : > { %392 = vmatpush.bf16.msra.mxu0 %v564_v7 }
  0x3b   : > { %p757_p11 = pnand %p756_p2, %p752_p8 }
  0x3e   : > { %393 = vmatpush.bf16.msra.mxu0 %v563_v8 }
  0x42   : > { %394 = vmatpush.bf16.msra.mxu0 %v562_v10 }
  0x46   : > { %395 = vmatpush.bf16.msra.mxu0 %v561_v12 }
  0x4a   : > { %396 = vmatpush.bf16.msra.mxu0 %v560_v13 }
  0x4e   : > { %397 = vmatpush.bf16.msra.mxu0 %v559_v17 }
  0xa4   : > { %v275_v1 = vpop.xlane.xlu0 %274 }
  0xa5   : > { %v276_v2 = vmul.f32 0.0078125, %v275_v1 }
  0xa7   : > { %v277_v3 = vsub.f32 %v949_v0, %v276_v2 }
  0xa9   : > { %v278_v4 = vmul.f32 %v277_v3, %v277_v3 }
  0xab   : > { %279 = vadd.xlane.f32.xlu0 %v278_v4 }
 0x11e   : > { %v280_v9 = vpop.xlane.xlu0 %279 }
 0x11f   : > { %v281_v11 = vmul.f32 0.007874016, %v280_v9 }
 0x121   : > { %639 = vrsqrt.f32 %v281_v11  ;;  %vm289_vm0 = vcmp.eq.f32.partialorder %v281_v11, inf  ;;  %v292_v22 = vand.u32 2147483648, %v281_v11  ;;  %vm291_vm1 = vcmp.eq.f32.partialorder %v281_v11, 0.0 }
 0x127   : > { %v640_v14 = vpop.eup %639 }
 0x128   : > { %v283_v15 = vmul.f32 %v640_v14, %v281_v11 }
 0x12a   : > { %v284_v16 = vmul.f32 %v640_v14, %v283_v15 }
 0x12c   : > { %v285_v18 = vmul.f32 0.5, %v284_v16 }
 0x12e   : > { %v286_v19 = vsub.f32 1.5, %v285_v18 }
 0x130   : > { %v287_v20 = vmul.f32 %v640_v14, %v286_v19 }
 0x132   : > { %v288_v21 = vmul.f32 %v287_v20, %v281_v11 }
 0x134   : > { %v290_v23 = vsel %vm289_vm0, %v281_v11, %v288_v21 }
 0x135   : > { %v293_v24 = vsel %vm291_vm1, %v292_v22, %v290_v23 }
 0x136   : > { %v294_v25 = vadd.f32 1e-06, %v293_v24 }
 0x138   : > { %641 = vrcp.f32 %v294_v25  ;;  %v306_v29 = vand.u32 2147483648, %v294_v25  ;;  %v304_v31 = vand.u32 2147483647, %v294_v25  ;;  %vm300_vm3 = vweird.f32 %v294_v25 }
 0x13a   : > { %v307_v33 = vor.u32 1.1754944e-38, %v306_v29  ;;  %vm305_vm5 = vcmp.eq.f32.partialorder %v304_v31, 8.507059e+37 }
 0x13e   : > { %v642_v26 = vpop.eup %641 }
 0x13f   : > { %v296_v27 = vmul.f32 %v642_v26, %v294_v25  ;;  %vm301_vm2 = vweird.f32 %v642_v26 }
 0x140   : > { %vm302_vm4 = vmor %vm300_vm3, %vm301_vm2 }
 0x141   : > { %v297_v28 = vsub.f32 1.0, %v296_v27 }
 0x143   : > { %v298_v30 = vmul.f32 %v642_v26, %v297_v28 }
 0x145   : > { %v299_v32 = vadd.f32 %v642_v26, %v298_v30 }
 0x147   : > { %v303_v34 = vsel %vm302_vm4, %v642_v26, %v299_v32 }
 0x148   : > { %v308_v36 = vsel %vm305_vm5, %v307_v33, %v303_v34 }
 0x149   : > { %v310_v37 = vmul.f32 %v308_v36, %v277_v3 }
 0x14b   : > { %v315_v39 = vmul.f32 %v636_v35, %v310_v37 }
 0x14d   : > { %v320_v40 = vadd.f32 %v637_v38, %v315_v39 }
 0x14f   : > { %v321_v41 = vpack.c.bf16 %v320_v40, %v320_v40 }
 0x151   : > { %398 = vmatmul.bf16.vlgmr.msra.gmra.mxu0 %v321_v41 }
 0x1ce   : > { %v399_v43 = vpop.f32.mrf.mxu0 }
 0x1cf   : > { %v400_v44 = vadd.f32 %v638_v42, %v399_v43 }
 0x1d1   : > { %v403_v45 = vmax.f32 %v400_v44, 0.0 }
 0x1d3   : > { %v404_v46 = vadd.f32 %v403_v45, %v949_v0 }
 0x1d5   : > { %405 = vst [vmem:[%s272_s27] sm:$0xff] %v404_v46 }
 0x1d6   : > { %v401_v47 = vpop.f32.mrf.mxu0 }
 0x1d7   : > { %760 = shalt.err (!%p757_p11)
}
 0x1d8   : > { %577 = dma.vmem_to_hbm [thread:$0]  (%p908_p5), %s420_s28, 128, %s422_s30, %s407_s22  }
 0x1d9 PF: > { %s433_s26 = sand.u32 1, %s791_s18   ;;  %p1006_p12 = scmp.ge.s32.totalorder %s803_s21, 2 }
 0x1da   : > { %s434_s10 = scalar_lea.sflag [#allocation4], %s433_s26 }
 0x1db   : > { %p591_p13 = pnand %p1006_p12, %p874_p6 }
 0x1dd   : > { %p592_p0 = pneg %p591_p13 }
 0x1df   : > { %786 = dma.done.wait (%p592_p0), %s434_s10, 128  }
 0x1e0   : > { %788 = vsyncadd (%p592_p0), %s434_s10, 4294967168  ;;  %p19_p3 = scmp.ge.s32.totalorder %s895_s14, 4   ;;  %s1007_s18 = smov %s795_s19 }
 0x1e1   : > { %s1008_s19 = smov %s799_s20  ;;  %s1009_s20 = smov %s904_s17 }
 0x1e2   : > { %s1010_s21 = smov %s895_s14  ;;  %21 = sbr.rel (!%p19_p3) target bundleno = 6 (0x6), region = 93 }
 0x1e7   :  { %440 = vsyncpa [#allocation3], 1 }
 0x1e8   :  { %442 = vsyncpa [#allocation3 + $0x1], 1 }
 0x1e9   :  { %443 = vsyncpa [#allocation6], 1 }
 0x1ea   :  { %444 = vsyncpa [#allocation4], 1 }
 0x1eb   :  { %446 = vsyncpa [#allocation4 + $0x1], 1 }

</bundles_post_ra>
